<compile_context>
chip_gen: v5e
topology: v5e:2x2
jax: 0.10.0
libtpu: 0.0.40
codegen_flags: <defaults>
</compile_context>

<pallas_src>
import math

import jax
import jax.numpy as jnp
from jax.experimental import pallas as pl
from jax.experimental.pallas import tpu as pltpu


def _cov_factor_kernel(wt_ref, wbd_ref, bias_ref, sigma_ref, out_ref):
    """out[0] = [W^T S_0 W | W^T S_1 W | ...] + diag(relu(bias)) per block."""
    wt = wt_ref[...]        # (N, K)        W^T (pre-transposed in wrapper)
    wbd = wbd_ref[...]      # (bb*K, bb*N)  block-diagonal W (built in wrapper)
    sigma = sigma_ref[0]    # (K, bb*K)     lane-packed [S_0 | S_1 | ...]

    N = wt.shape[0]
    bbN = wbd.shape[1]

    # Two fused, lane-dense MXU calls for the whole batch block.
    sw = jnp.dot(sigma, wbd, preferred_element_type=jnp.float32)   # (K, bb*N)
    quad = jnp.dot(wt, sw, preferred_element_type=jnp.float32)     # (N, bb*N)

    # + diag(relu(bias)) for every lane-packed batch: (r, c) lies on a
    # diagonal iff c % N == r.  Cheap VPU work, recomputed per step so it is
    # safe under megacore "parallel" sharding of the grid axis.
    rows = jax.lax.broadcasted_iota(jnp.int32, (N, bbN), 0)
    cols = jax.lax.broadcasted_iota(jnp.int32, (N, bbN), 1)
    diag_add = jnp.where((cols % N) == rows, bias_ref[...], 0.0)   # (N, bb*N)

    out_ref[0] = (quad + diag_add).astype(out_ref.dtype)


def _round_up(x, m):
    return ((x + m - 1) // m) * m


def _tpu_params():
    """Returns (vmem_capacity_bytes, two_tensorcores_per_chip)."""
    vmem_cap = 128 * 2**20
    try:
        info = pltpu.get_tpu_info()
        vmem_cap = int(getattr(info, "vmem_capacity_bytes", vmem_cap))
    except Exception:
        pass
    # v7x: 64 MiB VMEM per TensorCore and 2 TCs share the parallel grid axis;
    # v5e/v6e: 128 MiB VMEM, single TensorCore.
    two_cores = vmem_cap <= 64 * 2**20
    return vmem_cap, two_cores


def _block_bytes(bb, K, N):
    """Conservative per-grid-step VMEM working set (f32)."""
    sig = bb * K * K              # packed sigma block
    out = N * bb * N              # packed output block
    wbd = bb * K * bb * N         # block-diagonal W (constant index map)
    wtb = N * K + N               # W^T + bias column (constant index map)
    inter = K * bb * N + 2 * N * bb * N   # matmul intermediates / vreg spill
    # Everything (including constant operands) counted as double-buffered,
    # plus ~20% and 1 MiB headroom for compiler-internal scratch.
    return int(1.2 * 4 * (2 * (sig + out + wbd + wtb) + inter)) + (1 << 20)


def _pick_block_batch(B, K, N, budget, two_cores):
    """Batches per grid step.

    Guarantees bb*N % 128 == 0 (unmasked lane-dense stores) for N < 128;
    skips packing (bb=1) for N >= 128; keeps >= 4 grid steps on two-TC chips
    when the batch allows; shrinks bb until the working set fits `budget`.
    """
    if N >= 128:
        # Stores are already lane-dense; packing would only add a wrapper
        # transpose (an extra HBM round trip of the output).
        return 1

    lane_quant = 128 // math.gcd(N, 128)     # smallest bb with bb*N % 128 == 0
    bb_cap = _round_up(B, lane_quant)        # never pad beyond one quantum

    if two_cores:
        # v7x: both TensorCores share the parallel axis -> aim for >= 512
        # output lanes per step but keep >= 4 grid steps (>= 2 per core).
        bb = min(_round_up(pl.cdiv(512, N), lane_quant), bb_cap)
        while bb > lane_quant and pl.cdiv(B, bb) < 4:
            bb -= lane_quant
    else:
        # v5e/v6e: single TensorCore -> fewest grid steps that fit VMEM,
        # capped at ~4096 output lanes per step (diminishing returns beyond).
        lanes_cap = max((4096 // N) // lane_quant * lane_quant, lane_quant)
        bb = min(bb_cap, lanes_cap)

    # Shrink geometrically (lane-aligned) until the working set fits VMEM.
    while bb > lane_quant and _block_bytes(bb, K, N) > budget:
        bb = max(lane_quant, _round_up(bb // 2, lane_quant))
    # Last resort (correctness over lane density) for pathological shapes.
    while bb > 1 and _block_bytes(bb, K, N) > budget:
        bb //= 2
    return max(bb, 1)


def cov_factor_forward(weight, bias, factor_cov_mat, block_batch=None):
    """weight: (K, N), bias: (N,), factor_cov_mat: (B, K, K) -> (B, N, N)."""
    weight = weight.astype(jnp.float32)
    bias = bias.astype(jnp.float32)
    sigma = factor_cov_mat.astype(jnp.float32)

    K, N = weight.shape
    B = sigma.shape[0]

    vmem_cap, two_cores = _tpu_params()
    if two_cores:
        budget = int(0.6 * vmem_cap)                       # ~38 MiB on v7x
    else:
        budget = int(min(0.78 * vmem_cap, 100 * 2**20))    # ~100 MiB on v5e/v6e

    if block_batch is not None:
        bb = max(int(block_batch), 1)
        while bb > 1 and _block_bytes(bb, K, N) > budget:  # VMEM guard
            bb //= 2
    else:
        bb = _pick_block_batch(B, K, N, budget, two_cores)

    num_blocks = pl.cdiv(B, bb)
    b_pad = num_blocks * bb
    if b_pad != B:
        sigma = jnp.pad(sigma, ((0, b_pad - B), (0, 0), (0, 0)))

    # ---- Loop-invariant operands, built ONCE in the wrapper ----
    wt = weight.T                                                    # (N, K)
    w_blockdiag = jnp.kron(jnp.eye(bb, dtype=jnp.float32), weight)   # (bb*K, bb*N)
    bias_col = jnp.maximum(bias, 0.0).reshape(N, 1)                  # (N, 1)

    # Lane-packed sigma: block i is [S_{i*bb} | S_{i*bb+1} | ...]  (K, bb*K).
    sigma_packed = (sigma.reshape(num_blocks, bb, K, K)
                    .transpose(0, 2, 1, 3)
                    .reshape(num_blocks, K, bb * K))

    blk_bytes = _block_bytes(bb, K, N)
    vmem_limit = int(min(budget, max(2 * blk_bytes, 16 * 2**20)))

    out_packed = pl.pallas_call(
        _cov_factor_kernel,
        out_shape=jax.ShapeDtypeStruct((num_blocks, N, bb * N), jnp.float32),
        grid_spec=pltpu.PrefetchScalarGridSpec(
            num_scalar_prefetch=0,
            grid=(num_blocks,),
            in_specs=[
                pl.BlockSpec((N, K), lambda i: (0, 0)),             # W^T
                pl.BlockSpec((bb * K, bb * N), lambda i: (0, 0)),   # blockdiag(W)
                pl.BlockSpec((N, 1), lambda i: (0, 0)),             # relu(bias)
                pl.BlockSpec((1, K, bb * K), lambda i: (i, 0, 0)),  # Sigma slab
            ],
            out_specs=pl.BlockSpec((1, N, bb * N), lambda i: (i, 0, 0)),
        ),
        compiler_params=pltpu.CompilerParams(
            dimension_semantics=("parallel",),
            vmem_limit_bytes=vmem_limit,
        ),
    )(wt, w_blockdiag, bias_col, sigma_packed)

    if bb == 1:
        # Already (B, N, N); no unpack epilogue (no extra HBM round trip).
        out = out_packed.reshape(b_pad, N, N)
    else:
        # Unpack the lane-dense (num_blocks, N, bb*N) layout to (B, N, N).
        out = (out_packed.reshape(num_blocks, N, bb, N)
               .transpose(0, 2, 1, 3)
               .reshape(b_pad, N, N))
    return out[:B]


def factor_cov_model(x):
    """Simple deterministic factor-covariance submodel (sample covariance).

    x: (B, T, K) -> (B, K, K). Glue only; the CovFactor hot path is the kernel.
    """
    xc = x - x.mean(axis=1, keepdims=True)
    return jnp.einsum("btk,btl->bkl", xc, xc) / (x.shape[1] - 1)


class CovFactorJAX:
    """JAX/Pallas mirror of the PyTorch CovFactor module (init='random')."""

    def __init__(self, in_features, out_features, key):
        # init == 'random': weight ~ U[0,1), bias = ones (deterministic via key)
        self.weight = jax.random.uniform(
            key, (in_features, out_features), dtype=jnp.float32)
        self.bias = jnp.ones((out_features,), dtype=jnp.float32)

    def __call__(self, x):
        sigma = factor_cov_model(x)                       # (B, K, K)
        return cov_factor_forward(self.weight, self.bias, sigma)


if __name__ == "__main__":
    # batch, time, in_features (factors), out_features
    B, T, K, N = 16, 32, 8, 16

    key = jax.random.PRNGKey(0)
    k_w, k_x = jax.random.split(key)

    model = CovFactorJAX(in_features=K, out_features=N, key=k_w)
    x = jax.random.normal(k_x, (B, T, K), dtype=jnp.float32)

    out = model(x)
    jax.block_until_ready(out)

    # Reference check in plain JAX.
    sigma_ref = factor_cov_model(x)
    quad_ref = jnp.einsum("kn,bkl,lm->bnm", model.weight, sigma_ref, model.weight)
    ref = quad_ref + jnp.diag(jnp.maximum(model.bias, 0.0))[None]
    assert out.shape == (B, N, N)
    assert jnp.allclose(out, ref, atol=1e-3, rtol=1e-4), (
        float(jnp.max(jnp.abs(out - ref))))

    print("KERNEL_OK")
</pallas_src>

<mosaic_0001>
module attributes {stable_mosaic.version = 11 : i64} {
  func.func @_cov_factor_kernel(%arg0: i32, %arg1: memref<16x8xf32, #tpu.memory_space<vmem>>, %arg2: memref<128x256xf32, #tpu.memory_space<vmem>>, %arg3: memref<16x1xf32, #tpu.memory_space<vmem>>, %arg4: memref<1x8x128xf32, #tpu.memory_space<vmem>>, %arg5: memref<1x16x256xf32, #tpu.memory_space<vmem>>) attributes {dimension_semantics = [#tpu.dimension_semantics<parallel>], iteration_bounds = array<i64: 1>, scalar_prefetch = 0 : i64, scratch_operands = 0 : i64, tpu.core_type = #tpu.core_type<tc>, window_params = [{pipeline_mode = #tpu.pipeline_mode<synchronous>, transform_indices = @transform_0, window_bounds = array<i64: 16, 8>}, {pipeline_mode = #tpu.pipeline_mode<synchronous>, transform_indices = @transform_1, window_bounds = array<i64: 128, 256>}, {pipeline_mode = #tpu.pipeline_mode<synchronous>, transform_indices = @transform_2, window_bounds = array<i64: 16, 1>}, {transform_indices = @transform_3, window_bounds = array<i64: 1, 8, 128>}, {transform_indices = @transform_4, window_bounds = array<i64: 1, 16, 256>}]} {
    %c0 = arith.constant 0 : index
    %c0_0 = arith.constant 0 : index
    %0 = vector.load %arg1[%c0, %c0_0] : memref<16x8xf32, #tpu.memory_space<vmem>>, vector<16x8xf32>
    %c0_1 = arith.constant 0 : index
    %c0_2 = arith.constant 0 : index
    %1 = vector.load %arg2[%c0_1, %c0_2] : memref<128x256xf32, #tpu.memory_space<vmem>>, vector<128x256xf32>
    %c0_3 = arith.constant 0 : index
    %c0_4 = arith.constant 0 : index
    %c0_5 = arith.constant 0 : index
    %2 = vector.load %arg4[%c0_3, %c0_4, %c0_5] : memref<1x8x128xf32, #tpu.memory_space<vmem>>, vector<1x8x128xf32>
    %3 = vector.shape_cast %2 : vector<1x8x128xf32> to vector<8x128xf32>
    %cst = arith.constant dense<0.000000e+00> : vector<8x256xf32>
    %4 = tpu.matmul %3, %1, %cst {dimension_numbers = #tpu.dot_dimension_numbers<[1], [0], [0], [1], [0, 0, 1, 1], [], []>} : vector<8x128xf32>, vector<128x256xf32>, vector<8x256xf32> -> vector<8x256xf32>
    %cst_6 = arith.constant dense<0.000000e+00> : vector<16x256xf32>
    %5 = tpu.matmul %0, %4, %cst_6 {dimension_numbers = #tpu.dot_dimension_numbers<[1], [0], [0], [1], [0, 0, 1, 1], [], []>} : vector<16x8xf32>, vector<8x256xf32>, vector<16x256xf32> -> vector<16x256xf32>
    %6 = tpu.iota {dimensions = array<i32: 0>} : vector<16x256xi32>
    %7 = tpu.iota {dimensions = array<i32: 1>} : vector<16x256xi32>
    %c16_i32 = arith.constant 16 : i32
    %c0_i32 = arith.constant 0 : i32
    %8 = arith.cmpi eq, %c16_i32, %c0_i32 : i32
    %c1_i32 = arith.constant 1 : i32
    %9 = arith.select %8, %c1_i32, %c16_i32 : i32
    %10 = vector.broadcast %9 : i32 to vector<16x256xi32>
    %11 = arith.remsi %7, %10 : vector<16x256xi32>
    %c0_i32_7 = arith.constant 0 : i32
    %12 = vector.broadcast %c0_i32_7 : i32 to vector<16x256xi32>
    %13 = arith.cmpi ne, %11, %12 : vector<16x256xi32>
    %c0_i32_8 = arith.constant 0 : i32
    %14 = vector.broadcast %c0_i32_8 : i32 to vector<16x256xi32>
    %15 = arith.cmpi slt, %11, %14 : vector<16x256xi32>
    %c0_i32_9 = arith.constant 0 : i32
    %16 = arith.cmpi slt, %9, %c0_i32_9 : i32
    %17 = vector.broadcast %16 : i1 to vector<16x256xi1>
    %18 = vector.broadcast %17 : vector<16x256xi1> to vector<16x256xi1>
    %19 = arith.xori %15, %18 : vector<16x256xi1>
    %20 = arith.andi %19, %13 : vector<16x256xi1>
    %21 = vector.broadcast %9 : i32 to vector<16x256xi32>
    %22 = arith.addi %11, %21 : vector<16x256xi32>
    %23 = arith.select %20, %22, %11 : vector<16x256xi1>, vector<16x256xi32>
    %24 = arith.cmpi eq, %23, %6 : vector<16x256xi32>
    %c0_10 = arith.constant 0 : index
    %c0_11 = arith.constant 0 : index
    %25 = vector.load %arg3[%c0_10, %c0_11] : memref<16x1xf32, #tpu.memory_space<vmem>>, vector<16x1xf32>
    %cst_12 = arith.constant 0.000000e+00 : f32
    %26 = vector.shape_cast %25 : vector<16x1xf32> to vector<16x1xf32>
    %27 = vector.broadcast %26 : vector<16x1xf32> to vector<16x256xf32>
    %28 = vector.broadcast %cst_12 : f32 to vector<16x256xf32>
    %29 = arith.select %24, %27, %28 : vector<16x256xi1>, vector<16x256xf32>
    %30 = arith.addf %5, %29 : vector<16x256xf32>
    %c0_13 = arith.constant 0 : index
    %c0_14 = arith.constant 0 : index
    %c0_15 = arith.constant 0 : index
    %31 = vector.load %arg5[%c0_13, %c0_14, %c0_15] : memref<1x16x256xf32, #tpu.memory_space<vmem>>, vector<1x16x256xf32>
    %32 = vector.shape_cast %31 : vector<1x16x256xf32> to vector<16x256xf32>
    %33 = vector.shape_cast %30 : vector<16x256xf32> to vector<1x16x256xf32>
    tpu.vector_store %arg5[%c0_13, %c0_14, %c0_15], %33 {strides = array<i32>} : memref<1x16x256xf32, #tpu.memory_space<vmem>>, vector<1x16x256xf32>,
    return
  }
  func.func @transform_0(%arg0: i32) -> (i32, i32) {
    %c0_i32 = arith.constant 0 : i32
    %c0_i32_0 = arith.constant 0 : i32
    %c0_i32_1 = arith.constant 0 : i32
    return %c0_i32, %c0_i32_0 : i32, i32
  }
  func.func @transform_1(%arg0: i32) -> (i32, i32) {
    %c0_i32 = arith.constant 0 : i32
    %c0_i32_0 = arith.constant 0 : i32
    %c0_i32_1 = arith.constant 0 : i32
    return %c0_i32, %c0_i32_0 : i32, i32
  }
  func.func @transform_2(%arg0: i32) -> (i32, i32) {
    %c0_i32 = arith.constant 0 : i32
    %c0_i32_0 = arith.constant 0 : i32
    %c0_i32_1 = arith.constant 0 : i32
    return %c0_i32, %c0_i32_0 : i32, i32
  }
  func.func @transform_3(%arg0: i32) -> (i32, i32, i32) {
    %c0_i32 = arith.constant 0 : i32
    %c0_i32_0 = arith.constant 0 : i32
    %c0_i32_1 = arith.constant 0 : i32
    return %arg0, %c0_i32, %c0_i32_0 : i32, i32, i32
  }
  func.func @transform_4(%arg0: i32) -> (i32, i32, i32) {
    %c0_i32 = arith.constant 0 : i32
    %c0_i32_0 = arith.constant 0 : i32
    %c0_i32_1 = arith.constant 0 : i32
    return %arg0, %c0_i32, %c0_i32_0 : i32, i32, i32
  }
}

</mosaic_0001>

<bundles_post_ra>
// kernel: tpu_custom_call.1
= control target key start
LH: loop header
LB: loop body
LE: loop exit
PB: predicated region body
PF: predicated region fallthrough
CT: control target
= control target key end

     0   :  { %9 = vsyncpa [#allocation3], 0  ;;  %s354_s0 = inlined_call_operand.vmem [shape: f32[16,8], index: 0, kind: input, shape index: {}]   ;;  %s355_s1 = inlined_call_operand.hbm [shape: f32[128,256], index: 1, kind: input, shape index: {}]   ;;  %s356_s2 = inlined_call_operand.vmem [shape: f32[16,1], index: 2, kind: input, shape index: {}]   ;;  %s357_s3 = inlined_call_operand.vmem [shape: f32[1,8,128], index: 3, kind: input, shape index: {}]   ;;  %s358_s4 = inlined_call_operand.hbm [shape: f32[1,16,256], index: 4, kind: output, shape index: {}]  }
   0x1   :  { %10 = vsyncpa [#allocation4], 0  ;;  %s17_s17 = sshll.u32 %s355_s1, 4  ;;  %s297_s18 = smov [#allocation2]   ;;  %s18_s17 = int_to_ptr.hbm [resolvable:$true] %s17_s17 }
   0x2   :  { %s19_s19 = sshll.u32 %s297_s18, 4  ;;  %s298_s20 = smov 256   ;;  %s20_s19 = int_to_ptr.vmem [resolvable:$true] %s19_s19 }
   0x3   :  { %s299_s21 = smov 16  }
   0x4   :  { %25 = dma.hbm_to_vmem [thread:$0]  %s18_s17, 4096, %s20_s19, [#allocation3], %s298_s20, %s298_s20, %s299_s21  }
   0x5   :  { %293 = dma.done.wait [#allocation3], 4096  }
   0x6   :  { %294 = vsyncadd [#allocation3], 4294963200  ;;  %v66_v0 = vld [vmem:[#allocation2 + $0xf0] sm:$0xff]  ;;  %v67_v1 = vld [vmem:[#allocation2 + $0xf8] sm:$0xff]  ;;  %v300_v34 = vmov 0   ;;  %vm159_vm0 = vcmask 64512   ;;  %v109_v40 = vlaneseq }
   0x7   :  { %v64_v2 = vld [vmem:[#allocation2 + $0xe0] sm:$0xff]  ;;  %69 = vmatpush.msra.mxu0 %v66_v0  ;;  %89 = vmatpush.msra.mxu1 %v67_v1  ;;  %v65_v3 = vld [vmem:[#allocation2 + $0xe8] sm:$0xff]  ;;  %v62_v4 = vld [vmem:[#allocation2 + $0xd0] sm:$0xff]  ;;  %s222_s6 = sshll.u32 %s358_s4, 4  ;;  %s223_s6 = int_to_ptr.hbm [resolvable:$true] %s222_s6 }
   0x8   :  { %v63_v5 = vld [vmem:[#allocation2 + $0xd8] sm:$0xff]  ;;  %v60_v6 = vld [vmem:[#allocation2 + $0xc0] sm:$0xff]  ;;  %v61_v7 = vld [vmem:[#allocation2 + $0xc8] sm:$0xff]  ;;  %244 = vset.pattern.permute.xlu0 %v300_v34  ;;  %v113_v41 = vand.u32 127, %v109_v40  ;;  %v110_v45 = vshrl.u32 %v109_v40, 7 }
   0x9   :  { %70 = vmatpush.msra.mxu0 %v64_v2  ;;  %90 = vmatpush.msra.mxu1 %v65_v3  ;;  %v58_v8 = vld [vmem:[#allocation2 + $0xb0] sm:$0xff]  ;;  %v59_v9 = vld [vmem:[#allocation2 + $0xb8] sm:$0xff]  ;;  %v56_v10 = vld [vmem:[#allocation2 + $0xa0] sm:$0xff] }
   0xa   :  { %v57_v11 = vld [vmem:[#allocation2 + $0xa8] sm:$0xff]  ;;  %v54_v12 = vld [vmem:[#allocation2 + $0x90] sm:$0xff]  ;;  %v55_v13 = vld [vmem:[#allocation2 + $0x98] sm:$0xff]  ;;  %v114_v42 = vadd.s32 128, %v113_v41  ;;  %v119_v43 = vand.u32 15, %v113_v41  ;;  %v111_v51 = vadd.s32 8, %v110_v45 }
   0xb   :  { %71 = vmatpush.msra.mxu0 %v62_v4  ;;  %91 = vmatpush.msra.mxu1 %v63_v5  ;;  %v52_v14 = vld [vmem:[#allocation2 + $0x80] sm:$0xff]  ;;  %v53_v15 = vld [vmem:[#allocation2 + $0x88] sm:$0xff]  ;;  %v50_v16 = vld [vmem:[#allocation2 + $0x70] sm:$0xff] }
   0xc   :  { %v51_v17 = vld [vmem:[#allocation2 + $0x78] sm:$0xff]  ;;  %v48_v18 = vld [vmem:[#allocation2 + $0x60] sm:$0xff]  ;;  %v49_v19 = vld [vmem:[#allocation2 + $0x68] sm:$0xff]  ;;  %v126_v44 = vand.u32 15, %v114_v42  ;;  %vm139_vm1 = vcmp.eq.s32.totalorder %v119_v43, %v110_v45  ;;  %vm141_vm3 = vcmp.eq.s32.totalorder %v119_v43, %v111_v51 }
   0xd   :  { %72 = vmatpush.msra.mxu0 %v60_v6  ;;  %92 = vmatpush.msra.mxu1 %v61_v7  ;;  %v46_v20 = vld [vmem:[#allocation2 + $0x50] sm:$0xff]  ;;  %v47_v21 = vld [vmem:[#allocation2 + $0x58] sm:$0xff]  ;;  %v44_v22 = vld [vmem:[#allocation2 + $0x40] sm:$0xff] }
   0xe   :  { %v45_v23 = vld [vmem:[#allocation2 + $0x48] sm:$0xff]  ;;  %v42_v24 = vld [vmem:[#allocation2 + $0x30] sm:$0xff]  ;;  %v43_v25 = vld [vmem:[#allocation2 + $0x38] sm:$0xff]  ;;  %vm140_vm2 = vcmp.eq.s32.totalorder %v126_v44, %v110_v45  ;;  %vm142_vm4 = vcmp.eq.s32.totalorder %v126_v44, %v111_v51 }
   0xf   :  { %73 = vmatpush.msra.mxu0 %v58_v8  ;;  %93 = vmatpush.msra.mxu1 %v59_v9  ;;  %v40_v26 = vld [vmem:[#allocation2 + $0x20] sm:$0xff]  ;;  %v41_v27 = vld [vmem:[#allocation2 + $0x28] sm:$0xff]  ;;  %v38_v28 = vld [vmem:[#allocation2 + $0x10] sm:$0xff] }
  0x10   :  { %v39_v29 = vld [vmem:[#allocation2 + $0x18] sm:$0xff]  ;;  %v36_v30 = vld [vmem:[#allocation2] sm:$0xff]  ;;  %v37_v31 = vld [vmem:[#allocation2 + $0x8] sm:$0xff] }
  0x11   :  { %74 = vmatpush.msra.mxu0 %v56_v10  ;;  %94 = vmatpush.msra.mxu1 %v57_v11  ;;  %v68_v32 = vld [vmem:[%s357_s3] sm:$0xff]  ;;  %v144_v35 = vld [vmem:[%s356_s2 + $0x8] sm:$0xff] }
  0x12   :  { %v143_v33 = vld [vmem:[%s356_s2] sm:$0xff]  ;;  %v35_v39 = vld [vmem:[%s354_s0 + $0x8] sm:$0xff] }
  0x13   :  { %75 = vmatpush.msra.mxu0 %v54_v12  ;;  %95 = vmatpush.msra.mxu1 %v55_v13  ;;  %v34_v36 = vld [vmem:[%s354_s0] sm:$0xff]  ;;  %s301_s0 = smov [#allocation5]  }
  0x14   :  { %147 = vperm.xlu0 %244, %v143_v33   ;;  %s220_s2 = sshll.u32 %s301_s0, 4  ;;  %s221_s2 = int_to_ptr.vmem [resolvable:$true] %s220_s2 }
  0x15   :  { %76 = vmatpush.msra.mxu0 %v52_v14  ;;  %96 = vmatpush.msra.mxu1 %v53_v15 }
  0x17   :  { %77 = vmatpush.msra.mxu0 %v50_v16  ;;  %97 = vmatpush.msra.mxu1 %v51_v17 }
  0x19   :  { %78 = vmatpush.msra.mxu0 %v48_v18  ;;  %98 = vmatpush.msra.mxu1 %v49_v19 }
  0x1b   :  { %79 = vmatpush.msra.mxu0 %v46_v20  ;;  %99 = vmatpush.msra.mxu1 %v47_v21 }
  0x1c   :  { %152 = vperm.xlu0 %244, %v144_v35  }
  0x1d   :  { %80 = vmatpush.msra.mxu0 %v44_v22  ;;  %100 = vmatpush.msra.mxu1 %v45_v23 }
  0x1f   :  { %81 = vmatpush.msra.mxu0 %v42_v24  ;;  %101 = vmatpush.msra.mxu1 %v43_v25 }
  0x21   :  { %82 = vmatpush.msra.mxu0 %v40_v26  ;;  %102 = vmatpush.msra.mxu1 %v41_v27 }
  0x23   :  { %83 = vmatpush.msra.mxu0 %v38_v28  ;;  %103 = vmatpush.msra.mxu1 %v39_v29 }
  0x25   :  { %84 = vmatpush.msra.mxu0 %v36_v30  ;;  %104 = vmatpush.msra.mxu1 %v37_v31 }
  0x26   :  { %85 = vmatmul.f32.vlgmr.msra.gmra.mxu0 %v68_v32  ;;  %105 = vmatmul.f32.vlgmr.msra.gmra.mxu1 %v68_v32 }
  0x86   :  { %v148_v46 = vpop.permute.xlu0 %147 }
  0x87   :  { %v155_v47 = vsel %vm139_vm1, %v148_v46, 0.0  ;;  %v156_v48 = vsel %vm140_vm2, %v148_v46, 0.0 }
  0x8e   :  { %v153_v54 = vpop.permute.xlu0 %152 }
  0x8f   :  { %v157_v55 = vsel %vm141_vm3, %v153_v54, 0.0  ;;  %v158_v56 = vsel %vm142_vm4, %v153_v54, 0.0 }
  0xa3   :  { %v86_v37 = vpop.f32.mrf.mxu0  ;;  %v106_v38 = vpop.f32.mrf.mxu1 }
  0xa4   :  { %181 = vmatpush.msra.mxu2 %v86_v37  ;;  %204 = vmatpush.msra.mxu3 %v106_v38 }
  0xa5   :  { %235 = vmatmul.msk.f32.vlgmr.msra.gmra.mxu2 %vm159_vm0, %v34_v36  ;;  %237 = vmatmul.msk.f32.vlgmr.msra.gmra.mxu3 %vm159_vm0, %v34_v36 }
  0xad   :  { %236 = vmatmul.msk.f32.gmra.mxu2 %vm159_vm0, %v35_v39  ;;  %238 = vmatmul.msk.f32.gmra.mxu3 %vm159_vm0, %v35_v39 }
 0x128   :  { %v183_v49 = vpop.f32.mrf.mxu2  ;;  %v206_v50 = vpop.f32.mrf.mxu3 }
 0x129   :  { %v184_v52 = vadd.f32 %v183_v49, %v155_v47  ;;  %v207_v53 = vadd.f32 %v206_v50, %v156_v48 }
 0x12b   :  { %212 = vst [vmem:[#allocation5] sm:$0xff] %v184_v52 }
 0x12c   :  { %213 = vst [vmem:[#allocation5 + $0x8] sm:$0xff] %v207_v53 }
 0x130   :  { %v186_v57 = vpop.f32.mrf.mxu2  ;;  %v209_v58 = vpop.f32.mrf.mxu3 }
 0x131   :  { %v187_v59 = vadd.f32 %v186_v57, %v157_v55  ;;  %v210_v60 = vadd.f32 %v209_v58, %v158_v56 }
 0x133   :  { %214 = vst [vmem:[#allocation5 + $0x10] sm:$0xff] %v187_v59 }
 0x134   :  { %215 = vst [vmem:[#allocation5 + $0x18] sm:$0xff] %v210_v60 }
 0x135   :  { %228 = dma.vmem_to_hbm [thread:$0]  %s221_s2, 512, %s223_s6, [#allocation4], %s298_s20, %s298_s20, %s299_s21  }
 0x136   :  { %295 = dma.done.wait [#allocation4], 512  }
 0x137   :  { %296 = vsyncadd [#allocation4], 4294966784 }
 0x138   :  { %233 = vsyncpa [#allocation3], 1 }
 0x139   :  { %234 = vsyncpa [#allocation4], 1 }

</bundles_post_ra>
